<compile_context>
chip_gen: v7x
topology: tpu7x:2x2x1
jax: 0.10.0
libtpu: 0.0.40
codegen_flags: <defaults>
</compile_context>

<pallas_src>
import functools

import jax
import jax.numpy as jnp
from jax.experimental import pallas as pl
from jax.experimental.pallas import tpu as pltpu


def _round_up(x, m):
    return ((x + m - 1) // m) * m


def _pick_tile(dim, target, align):
    """Largest multiple of `align` that divides `dim` and is <= target, else dim."""
    if dim <= target:
        return dim
    t = (target // align) * align
    while t >= align:
        if dim % t == 0:
            return t
        t -= align
    return dim


def _skip_linear_kernel(compute_dtype, x_ref, w_ref, b_ref, o_ref, acc_ref=None):
    # Grid: (i over M row tiles, j over output-H tiles, k over contraction tiles).
    # x_ref: (tm, H) full row slab, block index depends only on i -> one HBM
    #        read per row tile.
    # w_ref: (tk, tn) block (k, j);  b_ref: (1, tn) block (0, j)
    # o_ref: (tm, tn) block (i, j), resident across k (reduction axis last).
    j = pl.program_id(1)
    k = pl.program_id(2)
    tk, tn = w_ref.shape

    # f32 output: accumulate straight into the resident output block.
    acc = o_ref if acc_ref is None else acc_ref

    x_k = x_ref[:, pl.ds(pl.multiple_of(k * tk, tk), tk)]
    w = w_ref[...]
    if compute_dtype is not None:
        x_k = x_k.astype(compute_dtype)
        w = w.astype(compute_dtype)
    contrib = jnp.dot(x_k, w, preferred_element_type=jnp.float32)

    @pl.when(k == 0)
    def _init():
        # Residual (x columns of THIS output tile, sliced from the resident
        # slab) folded into the init write; bias folded into the epilogue.
        # => exactly one full-tile accumulator pass per grid step.
        x_res = x_ref[:, pl.ds(pl.multiple_of(j * tn, tn), tn)]
        acc[...] = x_res.astype(jnp.float32) + contrib

    @pl.when(k != 0)
    def _accumulate():
        acc[...] += contrib

    @pl.when(k == pl.num_programs(2) - 1)
    def _store():
        o_ref[...] = (acc[...] + b_ref[...].astype(jnp.float32)).astype(o_ref.dtype)


def skip_connection_forward(inputs, w, b, *, tm_target=1024, th_target=512,
                            compute_dtype=None):
    """inputs = (old_input, h, mask); returns (old_input + linear(old_input), h, mask)."""
    old_input, h, mask = inputs
    B, S, H = old_input.shape
    out_dtype = old_input.dtype
    M = B * S
    x2d = old_input.reshape(M, H)
    b2d = b.reshape(1, H)

    isz = jnp.dtype(out_dtype).itemsize
    m_align = {4: 8, 2: 16, 1: 32}.get(isz, 8)      # sublane packing of stored dtype

    # --- output / contraction tile (same size; 256-aligned preferred for the
    #     v6e/v7x 2x256x256 MXU, 128 fallback, full-H otherwise) --------------
    if H % 256 == 0:
        th = _pick_tile(H, max(th_target, 256), 256)
    elif H % 128 == 0:
        th = _pick_tile(H, max(th_target, 128), 128)
    else:
        th = H                                       # full-dim block fallback

    use_acc = out_dtype != jnp.float32               # f32 accumulates into o_ref

    # --- row tile: as large as the VMEM budget allows (double-buffered x slab,
    #     W, bias, out tile + optional f32 scratch), snapped to a divisor of
    #     round_up(M, align) to avoid pathological padding --------------------
    budget = 40 << 20                                # working-set target (bytes)
    fixed = 2 * th * th * isz + 2 * th * isz         # W + bias (double buffered)
    per_row = 2 * H * isz + 2 * th * isz + (th * 4 if use_acc else 0)
    tm_cap = max(m_align, ((max(budget - fixed, 0)) // per_row) // m_align * m_align)
    target = max(m_align, min(_round_up(tm_target, m_align), tm_cap))

    M_al = _round_up(M, m_align)
    if M_al <= target:
        tm, M_pad = M_al, M_al
    else:
        t = _pick_tile(M_al, target, m_align)
        if t <= 2 * target:                          # acceptable divisor of M_al
            tm, M_pad = t, M_al
        else:                                        # bounded padding (< target rows)
            tm, M_pad = target, _round_up(M, target)

    if M_pad != M:
        x2d = jnp.pad(x2d, ((0, M_pad - M), (0, 0)))

    grid = (M_pad // tm, H // th, H // th)

    # --- real HBM traffic: x slab read once per row tile, W re-streamed once
    #     per row tile, bias per (row tile, j), output written once -----------
    n_row_tiles = M_pad // tm
    bytes_accessed = (M_pad * H * isz
                      + n_row_tiles * H * H * isz
                      + n_row_tiles * H * isz
                      + M_pad * H * isz)
    cost = pl.CostEstimate(
        flops=int(2 * M_pad * H * H + 2 * M_pad * H),
        transcendentals=0,
        bytes_accessed=int(bytes_accessed),
    )

    # Explicit VMEM limit: computed need + headroom, capped at 64 MiB so the
    # same tiling is valid on v5e/v6e (128 MiB phys, 16/32 MiB scoped default)
    # and v7x (64 MiB phys).
    vmem_need = fixed + tm * per_row
    vmem_limit = int(min(64 << 20, max(32 << 20, vmem_need + (4 << 20))))

    scratch = [pltpu.VMEM((tm, th), jnp.float32)] if use_acc else []

    out2d = pl.pallas_call(
        functools.partial(_skip_linear_kernel, compute_dtype),
        out_shape=jax.ShapeDtypeStruct((M_pad, H), out_dtype),
        grid_spec=pltpu.PrefetchScalarGridSpec(
            num_scalar_prefetch=0,
            grid=grid,
            in_specs=[
                # x: full row slab; index depends only on i, so the DMA is
                # issued once per row tile rather than once per (j, k).
                pl.BlockSpec((tm, H), lambda i, j, k: (i, 0)),
                pl.BlockSpec((th, th), lambda i, j, k: (k, j)),   # W
                pl.BlockSpec((1, th), lambda i, j, k: (0, j)),    # bias
            ],
            out_specs=pl.BlockSpec((tm, th), lambda i, j, k: (i, j)),
            scratch_shapes=scratch,
        ),
        compiler_params=pltpu.CompilerParams(
            dimension_semantics=("parallel", "parallel", "arbitrary"),
            vmem_limit_bytes=vmem_limit),
        cost_estimate=cost,
    )(x2d, w, b2d)

    new_input = out2d[:M].reshape(B, S, H)
    # TODO(synk): the k-invariant x slab could use pipeline_mode=pl.Buffered(1)
    # to save one slab of VMEM on v7x; kept at default double-buffering here.
    return (new_input, h, mask)


def _run_case(B, S, H, key, *, th_target=512, tm_target=1024, compute_dtype=None,
              atol=1e-4, rtol=1e-4):
    kx, kh, kw, kb = jax.random.split(key, 4)
    old_input = jax.random.normal(kx, (B, S, H), dtype=jnp.float32)
    h_state = jax.random.normal(kh, (B, S, H), dtype=jnp.float32)
    mask = jnp.ones((B, 1, S), dtype=jnp.float32)
    w = jax.random.normal(kw, (H, H), dtype=jnp.float32) / jnp.sqrt(H)
    b = jax.random.normal(kb, (H,), dtype=jnp.float32) * 0.01

    new_input, h_out, mask_out = skip_connection_forward(
        (old_input, h_state, mask), w, b,
        tm_target=tm_target, th_target=th_target, compute_dtype=compute_dtype)
    jax.block_until_ready(new_input)

    if compute_dtype is None:
        lin = old_input @ w
    else:
        lin = jnp.dot(old_input.astype(compute_dtype), w.astype(compute_dtype),
                      preferred_element_type=jnp.float32)
    ref = old_input + (lin + b)
    assert jnp.allclose(new_input, ref, atol=atol, rtol=rtol), (B, S, H)
    assert (h_out is h_state) and (mask_out is mask)


if __name__ == "__main__":
    key = jax.random.PRNGKey(0)
    k1, k2, k3 = jax.random.split(key, 3)

    # Case 1: batch=2, seq=8, hidden=128 — single-block path; f32 accumulates
    # directly into the resident output block (no scratch accumulator).
    _run_case(2, 8, 128, k1)

    # Case 2: batch=2, seq=10 (M=20 -> padded to 24), hidden=512, th_target=256:
    # exercises the tiled (j, k) grid, k==0 init / k==last epilogue, and the
    # j-sliced residual from the resident x slab.
    _run_case(2, 10, 512, k2, th_target=256)

    # Case 3: bf16 MXU path — inputs stay f32 in HBM, tiles are cast to bf16
    # before the dot, accumulation stays f32.
    _run_case(2, 8, 256, k3, th_target=128, compute_dtype=jnp.bfloat16,
              atol=2e-2, rtol=2e-2)

    print("KERNEL_OK")
</pallas_src>

<mosaic_0001>
module attributes {stable_mosaic.version = 11 : i64} {
  func.func @_skip_linear_kernel(%arg0: i32, %arg1: i32, %arg2: i32, %arg3: memref<16x128xf32, #tpu.memory_space<vmem>>, %arg4: memref<128x128xf32, #tpu.memory_space<vmem>>, %arg5: memref<1x128xf32, #tpu.memory_space<vmem>>, %arg6: memref<16x128xf32, #tpu.memory_space<vmem>>) attributes {dimension_semantics = [#tpu.dimension_semantics<parallel>, #tpu.dimension_semantics<parallel>, #tpu.dimension_semantics<arbitrary>], iteration_bounds = array<i64: 1, 1, 1>, scalar_prefetch = 0 : i64, scratch_operands = 0 : i64, tpu.core_type = #tpu.core_type<tc>, window_params = [{transform_indices = @transform_0, window_bounds = array<i64: 16, 128>}, {transform_indices = @transform_1, window_bounds = array<i64: 128, 128>}, {transform_indices = @transform_2, window_bounds = array<i64: 1, 128>}, {transform_indices = @transform_3, window_bounds = array<i64: 16, 128>}]} {
    %c128_i32 = arith.constant 128 : i32
    %0 = arith.muli %arg2, %c128_i32 : i32
    %1 = tpu.assume_multiple %0, 128 : i32
    %c0 = arith.constant 0 : index
    %2 = arith.index_cast %1 : i32 to index
    %3 = vector.load %arg3[%c0, %2] : memref<16x128xf32, #tpu.memory_space<vmem>>, vector<16x128xf32>
    %c0_0 = arith.constant 0 : index
    %c0_1 = arith.constant 0 : index
    %4 = vector.load %arg4[%c0_0, %c0_1] : memref<128x128xf32, #tpu.memory_space<vmem>>, vector<128x128xf32>
    %cst = arith.constant dense<0.000000e+00> : vector<16x128xf32>
    %5 = tpu.matmul %3, %4, %cst {dimension_numbers = #tpu.dot_dimension_numbers<[1], [0], [0], [1], [0, 0, 1, 1], [], []>} : vector<16x128xf32>, vector<128x128xf32>, vector<16x128xf32> -> vector<16x128xf32>
    %c0_i32 = arith.constant 0 : i32
    %6 = arith.cmpi eq, %arg2, %c0_i32 : i32
    %7 = arith.extui %6 : i1 to i32
    %c0_i32_2 = arith.constant 0 : i32
    %8 = arith.cmpi ne, %7, %c0_i32_2 : i32
    scf.if %8 {
      %c128_i32_7 = arith.constant 128 : i32
      %15 = arith.muli %arg1, %c128_i32_7 : i32
      %16 = tpu.assume_multiple %15, 128 : i32
      %c0_8 = arith.constant 0 : index
      %17 = arith.index_cast %16 : i32 to index
      %18 = vector.load %arg3[%c0_8, %17] : memref<16x128xf32, #tpu.memory_space<vmem>>, vector<16x128xf32>
      %19 = arith.addf %18, %5 : vector<16x128xf32>
      %c0_9 = arith.constant 0 : index
      %c0_10 = arith.constant 0 : index
      %20 = vector.load %arg6[%c0_9, %c0_10] : memref<16x128xf32, #tpu.memory_space<vmem>>, vector<16x128xf32>
      tpu.vector_store %arg6[%c0_9, %c0_10], %19 {strides = array<i32>} : memref<16x128xf32, #tpu.memory_space<vmem>>, vector<16x128xf32>,
    } else {
    }
    %c0_i32_3 = arith.constant 0 : i32
    %9 = arith.cmpi ne, %arg2, %c0_i32_3 : i32
    %10 = arith.extui %9 : i1 to i32
    %c0_i32_4 = arith.constant 0 : i32
    %11 = arith.cmpi ne, %10, %c0_i32_4 : i32
    scf.if %11 {
      %c0_7 = arith.constant 0 : index
      %c0_8 = arith.constant 0 : index
      %15 = vector.load %arg6[%c0_7, %c0_8] : memref<16x128xf32, #tpu.memory_space<vmem>>, vector<16x128xf32>
      %16 = arith.addf %15, %5 : vector<16x128xf32>
      %c0_9 = arith.constant 0 : index
      %c0_10 = arith.constant 0 : index
      %17 = vector.load %arg6[%c0_9, %c0_10] : memref<16x128xf32, #tpu.memory_space<vmem>>, vector<16x128xf32>
      tpu.vector_store %arg6[%c0_9, %c0_10], %16 {strides = array<i32>} : memref<16x128xf32, #tpu.memory_space<vmem>>, vector<16x128xf32>,
    } else {
    }
    %c0_i32_5 = arith.constant 0 : i32
    %12 = arith.cmpi eq, %arg2, %c0_i32_5 : i32
    %13 = arith.extui %12 : i1 to i32
    %c0_i32_6 = arith.constant 0 : i32
    %14 = arith.cmpi ne, %13, %c0_i32_6 : i32
    scf.if %14 {
      %c0_7 = arith.constant 0 : index
      %c0_8 = arith.constant 0 : index
      %15 = vector.load %arg6[%c0_7, %c0_8] : memref<16x128xf32, #tpu.memory_space<vmem>>, vector<16x128xf32>
      %c0_9 = arith.constant 0 : index
      %c0_10 = arith.constant 0 : index
      %16 = vector.load %arg5[%c0_9, %c0_10] : memref<1x128xf32, #tpu.memory_space<vmem>>, vector<1x128xf32>
      %17 = vector.broadcast %16 : vector<1x128xf32> to vector<16x128xf32>
      %18 = arith.addf %15, %17 : vector<16x128xf32>
      %c0_11 = arith.constant 0 : index
      %c0_12 = arith.constant 0 : index
      %19 = vector.load %arg6[%c0_11, %c0_12] : memref<16x128xf32, #tpu.memory_space<vmem>>, vector<16x128xf32>
      tpu.vector_store %arg6[%c0_11, %c0_12], %18 {strides = array<i32>} : memref<16x128xf32, #tpu.memory_space<vmem>>, vector<16x128xf32>,
    } else {
    }
    return
  }
  func.func @transform_0(%arg0: i32, %arg1: i32, %arg2: i32) -> (i32, i32) {
    %c0_i32 = arith.constant 0 : i32
    %c0_i32_0 = arith.constant 0 : i32
    return %arg0, %c0_i32 : i32, i32
  }
  func.func @transform_1(%arg0: i32, %arg1: i32, %arg2: i32) -> (i32, i32) {
    %c0_i32 = arith.constant 0 : i32
    return %arg2, %arg1 : i32, i32
  }
  func.func @transform_2(%arg0: i32, %arg1: i32, %arg2: i32) -> (i32, i32) {
    %c0_i32 = arith.constant 0 : i32
    %c0_i32_0 = arith.constant 0 : i32
    return %c0_i32, %arg1 : i32, i32
  }
  func.func @transform_3(%arg0: i32, %arg1: i32, %arg2: i32) -> (i32, i32) {
    %c0_i32 = arith.constant 0 : i32
    return %arg0, %arg1 : i32, i32
  }
}

</mosaic_0001>

<bundles_post_ra>
// kernel: tpu_custom_call.1
= control target key start
LH: loop header
LB: loop body
LE: loop exit
PB: predicated region body
PF: predicated region fallthrough
CT: control target
= control target key end

     0   :  { %8 = vsyncpa [#allocation3], 0  ;;  %s436_s0 = inlined_call_operand.hbm [shape: f32[16,128], index: 0, kind: input, shape index: {}]   ;;  %s437_s1 = inlined_call_operand.hbm [shape: f32[128,128], index: 1, kind: input, shape index: {}]   ;;  %s438_s2 = inlined_call_operand.vmem [shape: f32[1,128], index: 2, kind: input, shape index: {}]   ;;  %s439_s3 = inlined_call_operand.hbm [shape: f32[16,128], index: 3, kind: output, shape index: {}]  }
   0x1   :  { %9 = vsyncpa [#allocation6], 0 }
   0x2   :  { %10 = vsyncpa [#allocation4], 0  ;;  %s363_s12 = smov [#allocation2]   ;;  %s291_s16 = scalar_lea.hbm %s436_s0, 256 }
   0x3   :  { %s16_s13 = sshll.u32 %s363_s12, 4  ;;  %p292_p0 = scmp.ne.s32.totalorder %s436_s0, %s291_s16  ;;  %s17_s13 = int_to_ptr.vmem [resolvable:$true] %s16_s13 }
   0x4   :  { %p295_p1 = scmp.lt.u32.totalorder %s291_s16, %s436_s0 }
   0x6   :  { %p297_p2 = pnand %p295_p1, %p292_p0 }
   0x8   :  { %300 = shalt.err (!%p297_p2)
}
   0x9   :  { %s301_s21 = scalar_lea.vmem %s17_s13, 256  ;;  %p306_p4 = scmp.lt.s32.totalorder %s17_s13, %s17_s13 }
   0xa   :  { %p302_p3 = scmp.ne.s32.totalorder %s17_s13, %s301_s21  ;;  %p307_p5 = scmp.lt.s32.totalorder %s301_s21, %s301_s21 }
   0xc   :  { %p308_p6 = por %p307_p5, %p306_p4 }
   0xe   :  { %p309_p7 = pnand %p308_p6, %p302_p3 }
  0x10   :  { %312 = shalt.err (!%p309_p7)
}
  0x11   :  { %s364_s22 = smov 128   ;;  %s365_s23 = smov 8  }
  0x12   :  { %22 = dma.hbm_to_vmem [thread:$0]  %s436_s0, 256, %s17_s13, [#allocation3], %s364_s22, %s364_s22, %s365_s23  }
  0x13   :  { %s366_s26 = smov [#allocation5]   ;;  %s313_s30 = scalar_lea.hbm %s437_s1, 2048 }
  0x14   :  { %s28_s27 = sshll.u32 %s366_s26, 4  ;;  %p314_p8 = scmp.ne.s32.totalorder %s437_s1, %s313_s30  ;;  %s29_s27 = int_to_ptr.vmem [resolvable:$true] %s28_s27 }
  0x15   :  { %p317_p9 = scmp.lt.u32.totalorder %s313_s30, %s437_s1 }
  0x17   :  { %p319_p10 = pnand %p317_p9, %p314_p8 }
  0x19   :  { %322 = shalt.err (!%p319_p10)
}
  0x1a   :  { %s323_s8 = scalar_lea.vmem %s29_s27, 2048  ;;  %p328_p12 = scmp.lt.s32.totalorder %s29_s27, %s29_s27 }
  0x1b   :  { %p324_p11 = scmp.ne.s32.totalorder %s29_s27, %s323_s8  ;;  %p329_p13 = scmp.lt.s32.totalorder %s323_s8, %s323_s8 }
  0x1d   :  { %p330_p0 = por %p329_p13, %p328_p12 }
  0x1f   :  { %p331_p1 = pnand %p330_p0, %p324_p11 }
  0x21   :  { %334 = shalt.err (!%p331_p1)
}
  0x22   :  { %34 = dma.hbm_to_vmem [thread:$0]  %s437_s1, 2048, %s29_s27, [#allocation6], %s364_s22, %s364_s22, %s365_s23  }
  0x23   :  { %357 = dma.done.wait [#allocation3], 256  }
  0x24   :  { %358 = vsyncadd [#allocation3], 4294967040 }
  0x25   :  { %359 = dma.done.wait [#allocation6], 2048  }
  0x26   :  { %360 = vsyncadd [#allocation6], 4294965248  ;;  %v49_v0 = vld [vmem:[#allocation5] sm:$0xff]  ;;  %v50_v1 = vld [vmem:[#allocation5 + $0x8] sm:$0xff]  ;;  %s367_s11 = smov [#allocation7]  }
  0x27   :  { %v51_v2 = vld [vmem:[#allocation5 + $0x10] sm:$0xff]  ;;  %v254_v3 = vpack.c.bf16 %v50_v1, %v49_v0  ;;  %v52_v4 = vld [vmem:[#allocation5 + $0x18] sm:$0xff]  ;;  %v53_v6 = vld [vmem:[#allocation5 + $0x20] sm:$0xff]  ;;  %s185_s12 = sshll.u32 %s367_s11, 4  ;;  %s186_s12 = int_to_ptr.vmem [resolvable:$true] %s185_s12 }
  0x28   :  { %v258_v5 = vpack.c.bf16 %v52_v4, %v51_v2  ;;  %v54_v7 = vld [vmem:[#allocation5 + $0x28] sm:$0xff]  ;;  %v47_v9 = vld [vmem:[#allocation2] sm:$0xff]  ;;  %v56_v11 = vld [vmem:[#allocation5 + $0x38] sm:$0xff]  ;;  %s335_s13 = scalar_lea.vmem %s186_s12, 256  ;;  %p340_p3 = scmp.lt.s32.totalorder %s186_s12, %s186_s12 }
  0x29   :  { %255 = vmatprep.subr.bf16.mxu0 %v254_v3  ;;  %v262_v8 = vpack.c.bf16 %v54_v7, %v53_v6  ;;  %v55_v10 = vld [vmem:[#allocation5 + $0x30] sm:$0xff]  ;;  %251 = vmatprep.mubr.f32.mxu0 %v47_v9  ;;  %v57_v13 = vld [vmem:[#allocation5 + $0x40] sm:$0xff]  ;;  %v58_v14 = vld [vmem:[#allocation5 + $0x48] sm:$0xff]  ;;  %p336_p2 = scmp.ne.s32.totalorder %s186_s12, %s335_s13  ;;  %p341_p4 = scmp.lt.s32.totalorder %s335_s13, %s335_s13 }
  0x2a   :  { %257 = vmatpush3.bf16.msra.mxu0 %v254_v3  ;;  %v266_v12 = vpack.c.bf16 %v56_v11, %v55_v10  ;;  %v270_v15 = vpack.c.bf16 %v58_v14, %v57_v13  ;;  %v59_v16 = vld [vmem:[#allocation5 + $0x50] sm:$0xff]  ;;  %v60_v17 = vld [vmem:[#allocation5 + $0x58] sm:$0xff]  ;;  %v61_v19 = vld [vmem:[#allocation5 + $0x60] sm:$0xff] }
  0x2b   :  { %259 = vmatprep.subr.bf16.mxu0 %v258_v5  ;;  %v274_v18 = vpack.c.bf16 %v60_v17, %v59_v16  ;;  %v62_v20 = vld [vmem:[#allocation5 + $0x68] sm:$0xff]  ;;  %v63_v22 = vld [vmem:[#allocation5 + $0x70] sm:$0xff]  ;;  %v64_v23 = vld [vmem:[#allocation5 + $0x78] sm:$0xff]  ;;  %p342_p5 = por %p341_p4, %p340_p3 }
  0x2c   :  { %v278_v21 = vpack.c.bf16 %v62_v20, %v61_v19  ;;  %v282_v24 = vpack.c.bf16 %v64_v23, %v63_v22  ;;  %v48_v25 = vld [vmem:[#allocation2 + $0x8] sm:$0xff]  ;;  %v200_v27 = vld [vmem:[%s438_s2] ss:$0 sm:$0xff] }
  0x2d   :  { %p343_p6 = pnand %p342_p5, %p336_p2 }
  0x2e   :  { %261 = vmatpush3.bf16.msra.mxu0 %v258_v5 }
  0x2f   :  { %263 = vmatprep.subr.bf16.mxu0 %v262_v8 }
  0x32   :  { %265 = vmatpush3.bf16.msra.mxu0 %v262_v8 }
  0x33   :  { %267 = vmatprep.subr.bf16.mxu0 %v266_v12 }
  0x36   :  { %269 = vmatpush3.bf16.msra.mxu0 %v266_v12 }
  0x37   :  { %271 = vmatprep.subr.bf16.mxu0 %v270_v15 }
  0x3a   :  { %273 = vmatpush3.bf16.msra.mxu0 %v270_v15 }
  0x3b   :  { %275 = vmatprep.subr.bf16.mxu0 %v274_v18 }
  0x3e   :  { %277 = vmatpush3.bf16.msra.mxu0 %v274_v18 }
  0x3f   :  { %279 = vmatprep.subr.bf16.mxu0 %v278_v21 }
  0x42   :  { %281 = vmatpush3.bf16.msra.mxu0 %v278_v21 }
  0x43   :  { %283 = vmatprep.subr.bf16.mxu0 %v282_v24 }
  0x46   :  { %285 = vmatpush3.bf16.msra.mxu0 %v282_v24 }
  0x49   :  { %252 = vmatmul.mubr.f32.vlgmr.msra.gmra.mrb[0].mxu0 %v48_v25 }
 0x11c   :  { %v253_v26 = vpop.f32.mrb[0].mxu0 }
 0x11d   :  { %v151_v28 = vadd.f32 %v253_v26, %v48_v25  ;;  %v131_v29 = vpop.f32.mrb[1].mxu0 }
 0x11e   :  { %v150_v30 = vadd.f32 %v131_v29, %v47_v9 }
 0x11f   :  { %v177_v31 = vadd.f32 %v200_v27, %v151_v28 }
 0x120   :  { %v176_v32 = vadd.f32 %v200_v27, %v150_v30 }
 0x121   :  { %179 = vst [vmem:[#allocation7 + $0x8] sm:$0xff] %v177_v31 }
 0x122   :  { %178 = vst [vmem:[#allocation7] sm:$0xff] %v176_v32 }
 0x123   :  { %346 = shalt.err (!%p343_p6)
}
 0x124   :  { %s347_s2 = scalar_lea.hbm %s439_s3, 256 }
 0x125   :  { %p348_p7 = scmp.ne.s32.totalorder %s439_s3, %s347_s2  ;;  %p351_p8 = scmp.lt.u32.totalorder %s347_s2, %s439_s3 }
 0x127   :  { %p353_p9 = pnand %p351_p8, %p348_p7 }
 0x129   :  { %356 = shalt.err (!%p353_p9)
}
 0x12a   :  { %191 = dma.vmem_to_hbm [thread:$0]  %s186_s12, 256, %s439_s3, [#allocation4], %s364_s22, %s364_s22, %s365_s23  }
 0x12b   :  { %361 = dma.done.wait [#allocation4], 256  }
 0x12c   :  { %362 = vsyncadd [#allocation4], 4294967040 }
 0x12d   :  { %195 = vsyncpa [#allocation3], 1 }
 0x12e   :  { %196 = vsyncpa [#allocation6], 1 }
 0x12f   :  { %197 = vsyncpa [#allocation4], 1 }

</bundles_post_ra>
